<compile_context>
chip_gen: v6e
topology: v6e:2x2x1
jax: 0.10.0
libtpu: 0.0.40
codegen_flags: <defaults>
</compile_context>

<pallas_src>
import math

import jax
import jax.numpy as jnp
from jax.experimental import pallas as pl
from jax.experimental.pallas import tpu as pltpu


# ---------------------------------------------------------------------------
# Kernel body (shared by the grid-less and the tiled path)
# ---------------------------------------------------------------------------
def _linear_leaky_relu_kernel(ns_ref, x_ref, w_ref, b_ref, o_ref):
    # ns_ref: (1,)    f32 in SMEM  -- learnable negative_slope scalar
    # x_ref:  (tm, K) f32 in VMEM
    # w_ref:  (K, N)  f32 in VMEM  (weight stored transposed, resident)
    # b_ref:  (1, N)  f32 in VMEM
    # o_ref:  (tm, N) f32 in VMEM
    y = jnp.dot(x_ref[...], w_ref[...], preferred_element_type=jnp.float32)
    y = y + b_ref[...]
    ns = ns_ref[0]  # single scalar read; scalar-vector multiply below
    o_ref[...] = jnp.where(y >= 0.0, y, ns * y).astype(o_ref.dtype)


# ---------------------------------------------------------------------------
# Wrappers
# ---------------------------------------------------------------------------
def _cost_estimate(M, K, N):
    flops = 2 * M * K * N + 3 * M * N            # matmul + bias + leaky-relu
    bytes_accessed = 4 * (M * K + K * N + N + M * N) + 4
    return pl.CostEstimate(flops=flops, transcendentals=0,
                           bytes_accessed=bytes_accessed)


def _call_single_tile(ns, x, w_t, b2):
    """Grid-less path for small M: one MXU tile, no per-grid-step overhead."""
    M, K = x.shape
    N = w_t.shape[1]
    return pl.pallas_call(
        _linear_leaky_relu_kernel,
        out_shape=jax.ShapeDtypeStruct((M, N), jnp.float32),
        in_specs=[
            pl.BlockSpec(memory_space=pltpu.MemorySpace.SMEM),   # negative_slope
            pl.BlockSpec(memory_space=pltpu.MemorySpace.VMEM),   # x
            pl.BlockSpec(memory_space=pltpu.MemorySpace.VMEM),   # w^T (K, N)
            pl.BlockSpec(memory_space=pltpu.MemorySpace.VMEM),   # bias (1, N)
        ],
        out_specs=pl.BlockSpec(memory_space=pltpu.MemorySpace.VMEM),
        cost_estimate=_cost_estimate(M, K, N),
    )(ns, x, w_t, b2)


def _call_tiled(ns, x, w_t, b2, tile_m):
    """Batched path: grid over M, 'parallel' semantics, resident weight block."""
    M, K = x.shape
    N = w_t.shape[1]
    grid = (M // tile_m,)
    return pl.pallas_call(
        _linear_leaky_relu_kernel,
        out_shape=jax.ShapeDtypeStruct((M, N), jnp.float32),
        grid=grid,
        in_specs=[
            pl.BlockSpec(memory_space=pltpu.MemorySpace.SMEM),   # negative_slope
            pl.BlockSpec((tile_m, K), lambda i: (i, 0)),         # x tile
            pl.BlockSpec((K, N), lambda i: (0, 0)),              # weight (resident)
            pl.BlockSpec((1, N), lambda i: (0, 0)),              # bias (resident)
        ],
        out_specs=pl.BlockSpec((tile_m, N), lambda i: (i, 0)),
        compiler_params=pltpu.CompilerParams(
            dimension_semantics=("parallel",)),
        cost_estimate=_cost_estimate(M, K, N),
    )(ns, x, w_t, b2)


_SINGLE_TILE_MAX_M = 256
_TILE_M_CANDIDATES = (256, 128, 64, 32, 16, 8)


def linear_leaky_relu(params, x, *, use_pallas=True):
    """Forward pass of the module.  params: {'w_t': [K,N], 'b2': [1,N], 'ns': [1]}."""
    w_t, b2, ns = params["w_t"], params["b2"], params["ns"]
    M = x.shape[0]

    if not use_pallas or (M % 8 != 0):
        # Fused XLA fallback (recommended when this op sits inside a larger
        # graph at tiny M, or for ragged M).
        y = x @ w_t + b2
        return jnp.where(y >= 0.0, y, ns[0] * y)

    if M <= _SINGLE_TILE_MAX_M:
        return _call_single_tile(ns, x, w_t, b2)

    tile_m = next((t for t in _TILE_M_CANDIDATES if M % t == 0), None)
    if tile_m is None:
        y = x @ w_t + b2
        return jnp.where(y >= 0.0, y, ns[0] * y)
    return _call_tiled(ns, x, w_t, b2, tile_m)


def init_params(key, in_features=64, out_features=128, negative_slope=0.01):
    """Deterministic init mimicking torch.nn.Linear(64, 128); weight stored
    transposed [K, N] ONCE so no per-call transpose is ever paid."""
    kw, kb = jax.random.split(key)
    bound = 1.0 / math.sqrt(in_features)
    weight = jax.random.uniform(kw, (out_features, in_features),
                                minval=-bound, maxval=bound, dtype=jnp.float32)
    bias = jax.random.uniform(kb, (out_features,),
                              minval=-bound, maxval=bound, dtype=jnp.float32)
    return {
        "w_t": jnp.asarray(weight.T),                              # [K, N]
        "b2": bias.reshape(1, out_features),                       # [1, N]
        "ns": jnp.asarray(negative_slope, jnp.float32).reshape(1), # [1]
    }


def _reference(params, x):
    y = x @ params["w_t"] + params["b2"]
    return jnp.where(y >= 0.0, y, params["ns"][0] * y)


if __name__ == "__main__":
    key = jax.random.PRNGKey(0)
    kp, kx, kxb = jax.random.split(key, 3)
    params = init_params(kp)

    # --- Small-M path (matches the module spec: x1 = torch.randn(8, 64)) ---
    x1 = jax.random.normal(kx, (8, 64), dtype=jnp.float32)
    out_small = jax.block_until_ready(linear_leaky_relu(params, x1))
    ref_small = _reference(params, x1)
    assert out_small.shape == (8, 128)
    assert jnp.allclose(out_small, ref_small, atol=1e-5, rtol=1e-5)

    # --- Batched-M path: exercises the tiled "parallel" grid + resident weight ---
    xb = jax.random.normal(kxb, (512, 64), dtype=jnp.float32)
    out_big = jax.block_until_ready(linear_leaky_relu(params, xb))
    ref_big = _reference(params, xb)
    assert out_big.shape == (512, 128)
    assert jnp.allclose(out_big, ref_big, atol=1e-5, rtol=1e-5)

    print("KERNEL_OK")
</pallas_src>

<mosaic_0001>
module attributes {stable_mosaic.version = 11 : i64} {
  func.func @_linear_leaky_relu_kernel(%arg0: memref<1xf32, #tpu.memory_space<smem>>, %arg1: memref<8x64xf32, #tpu.memory_space<vmem>>, %arg2: memref<64x128xf32, #tpu.memory_space<vmem>>, %arg3: memref<1x128xf32, #tpu.memory_space<vmem>>, %arg4: memref<8x128xf32, #tpu.memory_space<vmem>>) attributes {dimension_semantics = [], scalar_prefetch = 0 : i64, scratch_operands = 0 : i64, tpu.core_type = #tpu.core_type<tc>} {
    %c0 = arith.constant 0 : index
    %c0_0 = arith.constant 0 : index
    %0 = vector.load %arg1[%c0, %c0_0] : memref<8x64xf32, #tpu.memory_space<vmem>>, vector<8x64xf32>
    %c0_1 = arith.constant 0 : index
    %c0_2 = arith.constant 0 : index
    %1 = vector.load %arg2[%c0_1, %c0_2] : memref<64x128xf32, #tpu.memory_space<vmem>>, vector<64x128xf32>
    %cst = arith.constant dense<0.000000e+00> : vector<8x128xf32>
    %2 = tpu.matmul %0, %1, %cst {dimension_numbers = #tpu.dot_dimension_numbers<[1], [0], [0], [1], [0, 0, 1, 1], [], []>} : vector<8x64xf32>, vector<64x128xf32>, vector<8x128xf32> -> vector<8x128xf32>
    %c0_3 = arith.constant 0 : index
    %c0_4 = arith.constant 0 : index
    %3 = vector.load %arg3[%c0_3, %c0_4] : memref<1x128xf32, #tpu.memory_space<vmem>>, vector<1x128xf32>
    %4 = vector.broadcast %3 : vector<1x128xf32> to vector<8x128xf32>
    %5 = arith.addf %2, %4 : vector<8x128xf32>
    %c0_5 = arith.constant 0 : index
    %6 = memref.load %arg0[%c0_5] : memref<1xf32, #tpu.memory_space<smem>>
    %cst_6 = arith.constant 0.000000e+00 : f32
    %7 = vector.broadcast %cst_6 : f32 to vector<8x128xf32>
    %8 = arith.cmpf oge, %5, %7 : vector<8x128xf32>
    %9 = vector.broadcast %6 : f32 to vector<8x128xf32>
    %10 = arith.mulf %9, %5 : vector<8x128xf32>
    %11 = arith.select %8, %5, %10 : vector<8x128xi1>, vector<8x128xf32>
    %c0_7 = arith.constant 0 : index
    %c0_8 = arith.constant 0 : index
    %12 = vector.load %arg4[%c0_7, %c0_8] : memref<8x128xf32, #tpu.memory_space<vmem>>, vector<8x128xf32>
    tpu.vector_store %arg4[%c0_7, %c0_8], %11 {strides = array<i32>} : memref<8x128xf32, #tpu.memory_space<vmem>>, vector<8x128xf32>,
    return
  }
}

</mosaic_0001>

<bundles_post_ra>
// kernel: tpu_custom_call.1
= control target key start
LH: loop header
LB: loop body
LE: loop exit
PB: predicated region body
PF: predicated region fallthrough
CT: control target
= control target key end

     0   :  { %10 = vsyncpa [#allocation4], 0  ;;  %s307_s0 = inlined_call_operand.<no memory space> [shape: f32[1], index: 0, kind: input, shape index: {}]   ;;  %s308_s1 = inlined_call_operand.hbm [shape: f32[8,64], index: 1, kind: input, shape index: {}]   ;;  %s309_s2 = inlined_call_operand.hbm [shape: f32[64,128], index: 2, kind: input, shape index: {}]   ;;  %s310_s3 = inlined_call_operand.vmem [shape: f32[1,128], index: 3, kind: input, shape index: {}]   ;;  %s311_s4 = inlined_call_operand.hbm [shape: f32[8,128], index: 4, kind: output, shape index: {}]  }
   0x1   :  { %11 = vsyncpa [#allocation7], 0 }
   0x2   :  { %12 = vsyncpa [#allocation5], 0  ;;  %s260_s15 = smov [#allocation3]   ;;  %s261_s17 = smov [#allocation6]  }
   0x3   :  { %s21_s16 = sshll.u32 %s260_s15, 4  ;;  %s30_s18 = sshll.u32 %s261_s17, 4  ;;  %s22_s16 = int_to_ptr.vmem [resolvable:$true] %s21_s16  ;;  %s31_s18 = int_to_ptr.vmem [resolvable:$true] %s30_s18 }
   0x4   :  { %s202_s19 = scalar_lea.vmem %s22_s16, 128  ;;  %p207_p1 = scmp.lt.s32.totalorder %s22_s16, %s22_s16 }
   0x5   :  { %p203_p0 = scmp.ne.s32.totalorder %s22_s16, %s202_s19  ;;  %p208_p2 = scmp.lt.s32.totalorder %s202_s19, %s202_s19 }
   0x7   :  { %p209_p3 = por %p208_p2, %p207_p1 }
   0x9   :  { %p210_p4 = pnand %p209_p3, %p203_p0 }
   0xb   :  { %213 = shalt.err (!%p210_p4)
}
   0xc   :  { %24 = dma.hbm_to_vmem [thread:$0]  %s308_s1, 128, %s22_s16, [#allocation4]  }
   0xd   :  { %s222_s22 = scalar_lea.vmem %s31_s18, 1024  ;;  %p227_p6 = scmp.lt.s32.totalorder %s31_s18, %s31_s18 }
   0xe   :  { %p223_p5 = scmp.ne.s32.totalorder %s31_s18, %s222_s22  ;;  %p228_p7 = scmp.lt.s32.totalorder %s222_s22, %s222_s22 }
  0x10   :  { %p229_p8 = por %p228_p7, %p227_p6 }
  0x12   :  { %p230_p9 = pnand %p229_p8, %p223_p5 }
  0x14   :  { %233 = shalt.err (!%p230_p9)
}
  0x15   :  { %s262_s23 = smov 128   ;;  %s263_s24 = smov 8  }
  0x16   :  { %36 = dma.hbm_to_vmem [thread:$0]  %s309_s2, 1024, %s31_s18, [#allocation7], %s262_s23, %s262_s23, %s263_s24  }
  0x17   :  { %254 = dma.done.wait [#allocation4], 128  }
  0x18   :  { %255 = vsyncadd [#allocation4], 4294967168 }
  0x19   :  { %256 = dma.done.wait [#allocation7], 1024  }
  0x1a   :  { %257 = vsyncadd [#allocation7], 4294966272  ;;  %v264_v0 = vmov 0.0   ;;  %vm265_vm0 = vmmov 0   ;;  %v53_v1 = vld [vmem:[#allocation6 + $0x38] sm:$0xff]  ;;  %v52_v2 = vld [vmem:[#allocation6 + $0x30] sm:$0xff]  ;;  %v137_v12 = vstv %s307_s0 }
  0x1b   :  { %168 = vmatprep.subr.mxu0 %v264_v0  ;;  %184 = vmatprep.mubr.msk.f32.mxu0 %vm265_vm0, %v264_v0  ;;  %v51_v3 = vld [vmem:[#allocation6 + $0x28] sm:$0xff]  ;;  %v50_v4 = vld [vmem:[#allocation6 + $0x20] sm:$0xff]  ;;  %v49_v5 = vld [vmem:[#allocation6 + $0x18] sm:$0xff]  ;;  %vm61_vm1 = vcmask 523264   ;;  %s266_s29 = smov [#allocation8]  }
  0x1c   :  { %169 = vmatpush3.msra.mxu0 %v53_v1  ;;  %v48_v6 = vld [vmem:[#allocation6 + $0x10] sm:$0xff]  ;;  %v47_v7 = vld [vmem:[#allocation6 + $0x8] sm:$0xff]  ;;  %v46_v8 = vld [vmem:[#allocation6] sm:$0xff]  ;;  %s147_s30 = sshll.u32 %s266_s29, 4  ;;  %s148_s30 = int_to_ptr.vmem [resolvable:$true] %s147_s30 }
  0x1d   :  { %170 = vmatprep.subr.mxu0 %v264_v0  ;;  %v45_v9 = vld [vmem:[#allocation3] sm:$0xff]  ;;  %s234_s5 = scalar_lea.vmem %s148_s30, 128  ;;  %p239_p11 = scmp.lt.s32.totalorder %s148_s30, %s148_s30 }
  0x1e   :  { %171 = vmatpush3.msra.mxu0 %v52_v2  ;;  %v157_v10 = vld [vmem:[%s310_s3] ss:$0 sm:$0xff]  ;;  %p235_p10 = scmp.ne.s32.totalorder %s148_s30, %s234_s5  ;;  %p240_p12 = scmp.lt.s32.totalorder %s234_s5, %s234_s5 }
  0x1f   :  { %172 = vmatprep.subr.mxu0 %v264_v0 }
  0x20   :  { %173 = vmatpush3.msra.mxu0 %v51_v3  ;;  %p241_p13 = por %p240_p12, %p239_p11 }
  0x21   :  { %174 = vmatprep.subr.mxu0 %v264_v0 }
  0x22   :  { %175 = vmatpush3.msra.mxu0 %v50_v4  ;;  %p242_p0 = pnand %p241_p13, %p235_p10 }
  0x23   :  { %176 = vmatprep.subr.mxu0 %v264_v0 }
  0x24   :  { %177 = vmatpush3.msra.mxu0 %v49_v5 }
  0x25   :  { %178 = vmatprep.subr.mxu0 %v264_v0 }
  0x26   :  { %179 = vmatpush3.msra.mxu0 %v48_v6 }
  0x27   :  { %180 = vmatprep.subr.mxu0 %v264_v0 }
  0x28   :  { %181 = vmatpush3.msra.mxu0 %v47_v7 }
  0x29   :  { %182 = vmatprep.subr.mxu0 %v264_v0 }
  0x2a   :  { %183 = vmatpush3.msra.mxu0 %v46_v8 }
  0x2b   :  { %185 = vmatmul.mubr.msk.f32.vlgmr.msra.gmra.mxu0 %vm61_vm1, %v45_v9 }
  0xeb   :  { %v131_v11 = vpop.f32.mrf.mxu0 }
  0xec   :  { %v132_v13 = vadd.f32 %v157_v10, %v131_v11 }
  0xed   :  { %v186_v14 = vpop.f32.mrf.mxu0 }
  0xee   :  { %v138_v15 = vmul.f32 %v137_v12, %v132_v13  ;;  %vm136_vm2 = vcmp.ge.f32.partialorder %v132_v13, 0.0 }
  0xf0   :  { %v139_v16 = vsel %vm136_vm2, %v132_v13, %v138_v15 }
  0xf1   :  { %140 = vst [vmem:[#allocation8] sm:$0xff] %v139_v16 }
  0xf2   :  { %245 = shalt.err (!%p242_p0)
}
  0xf3   :  { %150 = dma.vmem_to_hbm [thread:$0]  %s148_s30, 128, %s311_s4, [#allocation5]  }
  0xf4   :  { %258 = dma.done.wait [#allocation5], 128  }
  0xf5   :  { %259 = vsyncadd [#allocation5], 4294967168 }
  0xf6   :  { %154 = vsyncpa [#allocation4], 1 }
  0xf7   :  { %155 = vsyncpa [#allocation7], 1 }
  0xf8   :  { %156 = vsyncpa [#allocation5], 1 }

</bundles_post_ra>
